<compile_context>
chip_gen: v6e
topology: v6e:2x2x1
jax: 0.10.0
libtpu: 0.0.40
codegen_flags: <defaults>
</compile_context>

<pallas_src>
import functools

import jax
import jax.numpy as jnp
import numpy as np
from jax.experimental import pallas as pl
from jax.experimental.pallas import tpu as pltpu


# ------------------------------ fused kernel --------------------------------

def _leaky_relu(v):
    return jnp.where(v >= 0, v, 0.1 * v)


def sci_mr_kernel(t_ref, c_ref, x_ref, out_ref, *, off):
    """Single fused kernel: embedding gather + 2x(Linear+SiLU) + 2 ConvBlocks.

    t_ref   : (N,)     int32 diffusion steps                       (SMEM)
    c_ref   : (R, 128) f32 packed constant slab (single DMA)       (VMEM)
    x_ref   : (N, Cin, L) f32 input, PyTorch NCL layout            (VMEM)
    out_ref : (N, Cin, L) f32 output                               (VMEM)
    """
    N, Cin, L = x_ref.shape
    W = N * L
    tab_r0, _, E = off['table']
    K = off['masks'][1]
    Cm = off['b1i'][1]
    p = (K - 1) // 2

    def cview(name):
        r0, nr, nc = off[name]
        return c_ref[r0:r0 + nr, 0:nc]

    # ---- diffusion-embedding lookup: dynamic-row gather (no one-hot matmul) ----
    emb = jnp.concatenate(
        [c_ref[pl.ds(tab_r0 + t_ref[n], 1), 0:E] for n in range(N)], axis=0)    # (N, E)

    # ---- SinusoidalPositionEmbeddings projections: (Linear + SiLU) x 2 ----
    h = jnp.dot(emb, cview('p1_wT'), preferred_element_type=jnp.float32) + cview('p1_b')
    h = h * jax.nn.sigmoid(h)                                                    # SiLU
    h = jnp.dot(h, cview('p2_wT'), preferred_element_type=jnp.float32) + cview('p2_b')
    te = h * jax.nn.sigmoid(h)                                                   # (N, P)

    # ---- both blocks' time projections in one matmul, broadcast to (., N*L) ----
    tp = jax.lax.dot_general(cview('tw_cat'), te, (((1,), (1,)), ((), ())),
                             preferred_element_type=jnp.float32) + cview('tb_cat')   # (2Cm, N)
    tpb = jnp.dot(tp, cview('expand'), preferred_element_type=jnp.float32)            # (2Cm, W)
    tp1 = tpb[:Cm]
    tp2 = tpb[Cm:2 * Cm]

    masks = cview('masks')                                                        # (K, W)

    def conv_same(a, wname, bname):
        """Batched 'same' Conv1d over the whole batch: one im2col matmul."""
        C = a.shape[0]
        taps = []
        for k in range(K):
            d = k - p
            if d == 0:
                taps.append(a)
            elif d > 0:
                sh = jnp.concatenate([a[:, d:], jnp.zeros((C, d), jnp.float32)], axis=1)
                taps.append(sh * masks[k:k + 1, :])       # zero cross-sample taps
            else:
                sh = jnp.concatenate([jnp.zeros((C, -d), jnp.float32), a[:, :W + d]], axis=1)
                taps.append(sh * masks[k:k + 1, :])
        cols = jnp.concatenate(taps, axis=0)                                       # (K*C, W)
        return (jnp.dot(cview(wname), cols, preferred_element_type=jnp.float32)
                + cview(bname))

    # channel-major batched slab: samples side-by-side along lanes  (Cin, N*L)
    xs = jnp.concatenate([x_ref[n] for n in range(N)], axis=1)

    # block 1 (level_preprocess): Conv+BN(folded)+LeakyReLU(+Dropout=id)+time, Conv
    h1 = _leaky_relu(conv_same(xs, 'w1i', 'b1i')) + tp1
    y1 = _leaky_relu(conv_same(h1, 'w1o', 'b1o'))         # inter-block LeakyReLU(0.1)
    # block 2 (network_block)
    h2 = _leaky_relu(conv_same(y1, 'w2i', 'b2i')) + tp2
    y = conv_same(h2, 'w2o', 'b2o')                                                # (Cin, W)

    # write back in PyTorch NCL layout (static unroll; N is tiny)
    for n in range(N):
        out_ref[n] = y[:, n * L:(n + 1) * L]


# --------------------- one-time parameter preparation ------------------------

def _pack_rows(entries, *, width=128, align=8):
    """Pack 2-D f32 arrays row-wise into one (R, width) slab (single DMA).

    Each entry is zero-padded to `width` columns and its row count rounded up
    to `align` so every in-kernel view starts on an 8-sublane boundary.
    Returns (slab, {name: (row_start, n_rows, n_cols)}).
    """
    pieces, off, r = [], {}, 0
    for name, a in entries:
        a = jnp.asarray(a, jnp.float32)
        nr, nc = a.shape
        assert nc <= width, (name, a.shape)
        nr_pad = ((nr + align - 1) // align) * align
        buf = jnp.zeros((nr_pad, width), jnp.float32).at[:nr, :nc].set(a)
        pieces.append(buf)
        off[name] = (r, nr, nc)
        r += nr_pad
    return jnp.concatenate(pieces, axis=0), off


def prepare_params(params, *, batch, length, eps=1e-5):
    """Fold BN into in_conv, pre-reshape conv weights, build boundary masks and
    the batch-broadcast matrix, and pack everything into one (R,128) slab."""
    def fold_block(bp):
        scale = bp['bn_gamma'] / jnp.sqrt(bp['bn_var'] + eps)
        shift = bp['bn_beta'] - bp['bn_mean'] * scale
        cm, cin, k = bp['w_in'].shape
        cout = bp['w_out'].shape[0]
        # (Cout, Cin, K) -> (Cout, K, Cin) -> (Cout, K*Cin); BN scale folded in.
        w_in = (jnp.transpose(bp['w_in'], (0, 2, 1)).reshape(cm, k * cin)
                * scale[:, None])
        b_in = (scale * bp['b_in'] + shift).reshape(cm, 1)
        w_out = jnp.transpose(bp['w_out'], (0, 2, 1)).reshape(cout, k * cm)
        return w_in, b_in, w_out, bp['b_out'].reshape(cout, 1), bp['tw'], bp['tb']

    w1i, b1i, w1o, b1o, tw1, tb1 = fold_block(params['block1'])
    w2i, b2i, w2o, b2o, tw2, tb2 = fold_block(params['block2'])

    K = params['block1']['w_in'].shape[2]
    N, L, W = batch, length, batch * length
    p = (K - 1) // 2
    col = np.arange(W)
    pos = col % L
    masks = np.stack([((pos + k - p >= 0) & (pos + k - p < L)).astype(np.float32)
                      for k in range(K)], axis=0)                             # (K, W)
    expand = (col[None, :] // L == np.arange(N)[:, None]).astype(np.float32)  # (N, W)

    entries = [
        ('table', params['embedding']),
        ('p1_wT', params['p1_w'].T), ('p1_b', params['p1_b'].reshape(1, -1)),
        ('p2_wT', params['p2_w'].T), ('p2_b', params['p2_b'].reshape(1, -1)),
        ('tw_cat', jnp.concatenate([tw1, tw2], axis=0)),
        ('tb_cat', jnp.concatenate([tb1, tb2], axis=0).reshape(-1, 1)),
        ('w1i', w1i), ('b1i', b1i), ('w1o', w1o), ('b1o', b1o),
        ('w2i', w2i), ('b2i', b2i), ('w2o', w2o), ('b2o', b2o),
        ('masks', masks), ('expand', expand),
    ]
    width = max(128, max(int(np.asarray(a).shape[1]) for _, a in entries))
    width = ((width + 127) // 128) * 128
    return _pack_rows(entries, width=width)


# --------------------------------- forward -----------------------------------

def build_forward(off):
    """Build the jitted forward for a fixed packed-constant layout `off`."""
    kern = functools.partial(sci_mr_kernel, off=off)

    @jax.jit
    def fwd(const_slab, x_ncl, t):
        """x_ncl: (N, C, L) f32 (PyTorch layout); t: (N,) int diffusion steps."""
        N, Cin, L = x_ncl.shape
        return pl.pallas_call(
            kern,
            out_shape=jax.ShapeDtypeStruct((N, Cin, L), jnp.float32),
            in_specs=[pl.BlockSpec(memory_space=pltpu.MemorySpace.SMEM),
                      pl.BlockSpec(memory_space=pltpu.MemorySpace.VMEM),
                      pl.BlockSpec(memory_space=pltpu.MemorySpace.VMEM)],
            out_specs=pl.BlockSpec(memory_space=pltpu.MemorySpace.VMEM),
        )(t.astype(jnp.int32), const_slab, x_ncl)

    return fwd


# ------------------------- parameters (deterministic) -----------------------

def build_embedding(num_steps, dim):
    steps = jnp.arange(num_steps, dtype=jnp.float32)[:, None]
    dims = jnp.arange(dim // 2, dtype=jnp.float32)[None, :]
    table = steps * 10.0 ** (dims * 4.0 / (dim // 2 - 1.0))
    return jnp.concatenate([jnp.sin(table), jnp.cos(table)], axis=-1)


def init_params(key, *, num_diff_steps, embed_dim, proj_dim, in_ch, mid_ch, ksize):
    keys = jax.random.split(key, 8)

    def kaiming(k, shape, fan_in):
        return jax.random.normal(k, shape, jnp.float32) * np.sqrt(2.0 / fan_in)

    def lin(k, out_f, in_f):
        return jax.random.normal(k, (out_f, in_f), jnp.float32) / np.sqrt(in_f)

    def block(ks, cin, cmid, cout):
        return dict(
            w_in=kaiming(ks[0], (cmid, cin, ksize), cin * ksize),
            b_in=jnp.full((cmid,), 0.01, jnp.float32),
            bn_gamma=jnp.ones((cmid,), jnp.float32),
            bn_beta=jnp.zeros((cmid,), jnp.float32),
            bn_mean=jnp.zeros((cmid,), jnp.float32),
            bn_var=jnp.ones((cmid,), jnp.float32),
            tw=lin(ks[1], cmid, proj_dim),
            tb=jnp.full((cmid,), 0.02, jnp.float32),
            w_out=kaiming(ks[2], (cout, cmid, ksize), cmid * ksize),
            b_out=jnp.full((cout,), 0.03, jnp.float32),
        )

    return dict(
        embedding=build_embedding(num_diff_steps, embed_dim),
        p1_w=lin(keys[0], proj_dim, embed_dim),
        p1_b=jnp.full((proj_dim,), 0.01, jnp.float32),
        p2_w=lin(keys[1], proj_dim, proj_dim),
        p2_b=jnp.full((proj_dim,), 0.01, jnp.float32),
        block1=block(keys[2:5], in_ch, mid_ch, mid_ch),
        block2=block(keys[5:8], mid_ch, mid_ch, in_ch),
    )


# ----------------------------- pure-JAX reference ---------------------------

def ref_forward(params, x, t):
    emb = params['embedding'][t]
    h = emb @ params['p1_w'].T + params['p1_b']
    h = h * jax.nn.sigmoid(h)
    h = h @ params['p2_w'].T + params['p2_b']
    te = h * jax.nn.sigmoid(h)

    def conv1d_same(x_ncl, w_oik, b):
        K = w_oik.shape[-1]
        pad_l = (K - 1) // 2
        y = jax.lax.conv_general_dilated(
            x_ncl, w_oik, (1,), [(pad_l, K - 1 - pad_l)],
            dimension_numbers=('NCH', 'OIH', 'NCH'))
        return y + b[None, :, None]

    def block(x_ncl, bp, relu_out):
        eps = 1e-5
        h = conv1d_same(x_ncl, bp['w_in'], bp['b_in'])
        scale = bp['bn_gamma'] / jnp.sqrt(bp['bn_var'] + eps)
        shift = bp['bn_beta'] - bp['bn_mean'] * scale
        h = h * scale[None, :, None] + shift[None, :, None]
        h = jnp.where(h >= 0, h, 0.1 * h)
        tp = te @ bp['tw'].T + bp['tb']
        h = h + tp[:, :, None]
        y = conv1d_same(h, bp['w_out'], bp['b_out'])
        return jnp.where(y >= 0, y, 0.1 * y) if relu_out else y

    h = block(x, params['block1'], True)
    return block(h, params['block2'], False)


# --------------------------------- main --------------------------------------

if __name__ == "__main__":
    key = jax.random.PRNGKey(0)
    k_param, k_x, k_t = jax.random.split(key, 3)

    # params implied by the module: num_coords=3, model_channels=8,
    # kernel_size=3, num_diff_steps=50, embed_dim=32, proj_embed_dim=128
    N, C, L = 2, 3, 16
    num_steps, embed_dim, proj_dim, mid_ch, ksize = 50, 32, 128, 8, 3

    params = init_params(k_param, num_diff_steps=num_steps, embed_dim=embed_dim,
                         proj_dim=proj_dim, in_ch=C, mid_ch=mid_ch, ksize=ksize)
    const_slab, off = prepare_params(params, batch=N, length=L)   # one-time packing
    forward = build_forward(off)

    x = jax.random.normal(k_x, (N, C, L), jnp.float32)
    t = jax.random.randint(k_t, (N,), 0, num_steps, jnp.int32)

    y = jax.block_until_ready(forward(const_slab, x, t))

    y_ref = ref_forward(params, x, t)
    np.testing.assert_allclose(np.asarray(y), np.asarray(y_ref),
                               rtol=1e-4, atol=1e-4)
    print("KERNEL_OK")
</pallas_src>

<mosaic_0001>
module attributes {stable_mosaic.version = 11 : i64} {
  func.func @sci_mr_kernel(%arg0: memref<2xi32, #tpu.memory_space<smem>>, %arg1: memref<344x128xf32, #tpu.memory_space<vmem>>, %arg2: memref<2x3x16xf32, #tpu.memory_space<vmem>>, %arg3: memref<2x3x16xf32, #tpu.memory_space<vmem>>) attributes {dimension_semantics = [], scalar_prefetch = 0 : i64, scratch_operands = 0 : i64, tpu.core_type = #tpu.core_type<tc>} {
    %c0 = arith.constant 0 : index
    %0 = memref.load %arg0[%c0] : memref<2xi32, #tpu.memory_space<smem>>
    %c0_i32 = arith.constant 0 : i32
    %1 = arith.addi %c0_i32, %0 : i32
    %2 = arith.index_cast %1 : i32 to index
    %c0_0 = arith.constant 0 : index
    %3 = vector.load %arg1[%2, %c0_0] : memref<344x128xf32, #tpu.memory_space<vmem>>, vector<1x32xf32>
    %c1 = arith.constant 1 : index
    %4 = memref.load %arg0[%c1] : memref<2xi32, #tpu.memory_space<smem>>
    %c0_i32_1 = arith.constant 0 : i32
    %5 = arith.addi %c0_i32_1, %4 : i32
    %6 = arith.index_cast %5 : i32 to index
    %c0_2 = arith.constant 0 : index
    %7 = vector.load %arg1[%6, %c0_2] : memref<344x128xf32, #tpu.memory_space<vmem>>, vector<1x32xf32>
    %8 = tpu.concatenate %3, %7 in 0 : vector<1x32xf32>, vector<1x32xf32> -> vector<2x32xf32>
    %c56 = arith.constant 56 : index
    %c0_3 = arith.constant 0 : index
    %9 = vector.load %arg1[%c56, %c0_3] : memref<344x128xf32, #tpu.memory_space<vmem>>, vector<32x128xf32>
    %cst = arith.constant dense<0.000000e+00> : vector<2x128xf32>
    %10 = tpu.matmul %8, %9, %cst {dimension_numbers = #tpu.dot_dimension_numbers<[1], [0], [0], [1], [0, 0, 1, 1], [], []>} : vector<2x32xf32>, vector<32x128xf32>, vector<2x128xf32> -> vector<2x128xf32>
    %c88 = arith.constant 88 : index
    %c0_4 = arith.constant 0 : index
    %11 = vector.load %arg1[%c88, %c0_4] : memref<344x128xf32, #tpu.memory_space<vmem>>, vector<1x128xf32>
    %12 = vector.broadcast %11 : vector<1x128xf32> to vector<2x128xf32>
    %13 = arith.addf %10, %12 : vector<2x128xf32>
    %14 = arith.negf %13 : vector<2x128xf32>
    %15 = math.exp %14 : vector<2x128xf32>
    %cst_5 = arith.constant 1.000000e+00 : f32
    %16 = vector.broadcast %cst_5 : f32 to vector<2x128xf32>
    %17 = arith.addf %16, %15 : vector<2x128xf32>
    %18 = arith.divf %16, %17 : vector<2x128xf32>
    %19 = arith.mulf %13, %18 : vector<2x128xf32>
    %c96 = arith.constant 96 : index
    %c0_6 = arith.constant 0 : index
    %20 = vector.load %arg1[%c96, %c0_6] : memref<344x128xf32, #tpu.memory_space<vmem>>, vector<128x128xf32>
    %cst_7 = arith.constant dense<0.000000e+00> : vector<2x128xf32>
    %21 = tpu.matmul %19, %20, %cst_7 {dimension_numbers = #tpu.dot_dimension_numbers<[1], [0], [0], [1], [0, 0, 1, 1], [], []>} : vector<2x128xf32>, vector<128x128xf32>, vector<2x128xf32> -> vector<2x128xf32>
    %c224 = arith.constant 224 : index
    %c0_8 = arith.constant 0 : index
    %22 = vector.load %arg1[%c224, %c0_8] : memref<344x128xf32, #tpu.memory_space<vmem>>, vector<1x128xf32>
    %23 = vector.broadcast %22 : vector<1x128xf32> to vector<2x128xf32>
    %24 = arith.addf %21, %23 : vector<2x128xf32>
    %25 = arith.negf %24 : vector<2x128xf32>
    %26 = math.exp %25 : vector<2x128xf32>
    %cst_9 = arith.constant 1.000000e+00 : f32
    %27 = vector.broadcast %cst_9 : f32 to vector<2x128xf32>
    %28 = arith.addf %27, %26 : vector<2x128xf32>
    %29 = arith.divf %27, %28 : vector<2x128xf32>
    %30 = arith.mulf %24, %29 : vector<2x128xf32>
    %c232 = arith.constant 232 : index
    %c0_10 = arith.constant 0 : index
    %31 = vector.load %arg1[%c232, %c0_10] : memref<344x128xf32, #tpu.memory_space<vmem>>, vector<16x128xf32>
    %cst_11 = arith.constant dense<0.000000e+00> : vector<16x2xf32>
    %32 = tpu.matmul %31, %30, %cst_11 {dimension_numbers = #tpu.dot_dimension_numbers<[1], [1], [0], [0], [0, 0, 1, 0], [], []>} : vector<16x128xf32>, vector<2x128xf32>, vector<16x2xf32> -> vector<16x2xf32>
    %c248 = arith.constant 248 : index
    %c0_12 = arith.constant 0 : index
    %33 = vector.load %arg1[%c248, %c0_12] : memref<344x128xf32, #tpu.memory_space<vmem>>, vector<16x1xf32>
    %34 = vector.broadcast %33 : vector<16x1xf32> to vector<16x2xf32>
    %35 = arith.addf %32, %34 : vector<16x2xf32>
    %c336 = arith.constant 336 : index
    %c0_13 = arith.constant 0 : index
    %36 = vector.load %arg1[%c336, %c0_13] : memref<344x128xf32, #tpu.memory_space<vmem>>, vector<2x32xf32>
    %cst_14 = arith.constant dense<0.000000e+00> : vector<16x32xf32>
    %37 = tpu.matmul %35, %36, %cst_14 {dimension_numbers = #tpu.dot_dimension_numbers<[1], [0], [0], [1], [0, 0, 1, 1], [], []>} : vector<16x2xf32>, vector<2x32xf32>, vector<16x32xf32> -> vector<16x32xf32>
    %38 = vector.extract_strided_slice %37 {offsets = [0, 0], sizes = [8, 32], strides = [1, 1]} : vector<16x32xf32> to vector<8x32xf32>
    %39 = vector.extract_strided_slice %37 {offsets = [8, 0], sizes = [8, 32], strides = [1, 1]} : vector<16x32xf32> to vector<8x32xf32>
    %c328 = arith.constant 328 : index
    %c0_15 = arith.constant 0 : index
    %40 = vector.load %arg1[%c328, %c0_15] : memref<344x128xf32, #tpu.memory_space<vmem>>, vector<3x32xf32>
    %c0_16 = arith.constant 0 : index
    %c0_17 = arith.constant 0 : index
    %c0_18 = arith.constant 0 : index
    %41 = vector.load %arg2[%c0_16, %c0_17, %c0_18] : memref<2x3x16xf32, #tpu.memory_space<vmem>>, vector<1x3x16xf32>
    %42 = vector.shape_cast %41 : vector<1x3x16xf32> to vector<3x16xf32>
    %c1_19 = arith.constant 1 : index
    %c0_20 = arith.constant 0 : index
    %c0_21 = arith.constant 0 : index
    %43 = vector.load %arg2[%c1_19, %c0_20, %c0_21] : memref<2x3x16xf32, #tpu.memory_space<vmem>>, vector<1x3x16xf32>
    %44 = vector.shape_cast %43 : vector<1x3x16xf32> to vector<3x16xf32>
    %45 = tpu.concatenate %42, %44 in 1 : vector<3x16xf32>, vector<3x16xf32> -> vector<3x32xf32>
    %cst_22 = arith.constant 0.000000e+00 : f32
    %46 = vector.broadcast %cst_22 : f32 to vector<3x1xf32>
    %47 = vector.extract_strided_slice %45 {offsets = [0, 0], sizes = [3, 31], strides = [1, 1]} : vector<3x32xf32> to vector<3x31xf32>
    %48 = tpu.concatenate %46, %47 in 1 : vector<3x1xf32>, vector<3x31xf32> -> vector<3x32xf32>
    %49 = vector.extract_strided_slice %40 {offsets = [0, 0], sizes = [1, 32], strides = [1, 1]} : vector<3x32xf32> to vector<1x32xf32>
    %50 = vector.broadcast %49 : vector<1x32xf32> to vector<3x32xf32>
    %51 = arith.mulf %48, %50 : vector<3x32xf32>
    %52 = vector.extract_strided_slice %45 {offsets = [0, 1], sizes = [3, 31], strides = [1, 1]} : vector<3x32xf32> to vector<3x31xf32>
    %cst_23 = arith.constant 0.000000e+00 : f32
    %53 = vector.broadcast %cst_23 : f32 to vector<3x1xf32>
    %54 = tpu.concatenate %52, %53 in 1 : vector<3x31xf32>, vector<3x1xf32> -> vector<3x32xf32>
    %55 = vector.extract_strided_slice %40 {offsets = [2, 0], sizes = [1, 32], strides = [1, 1]} : vector<3x32xf32> to vector<1x32xf32>
    %56 = vector.broadcast %55 : vector<1x32xf32> to vector<3x32xf32>
    %57 = arith.mulf %54, %56 : vector<3x32xf32>
    %58 = tpu.concatenate %51, %45, %57 in 0 : vector<3x32xf32>, vector<3x32xf32>, vector<3x32xf32> -> vector<9x32xf32>
    %c264 = arith.constant 264 : index
    %c0_24 = arith.constant 0 : index
    %59 = vector.load %arg1[%c264, %c0_24] : memref<344x128xf32, #tpu.memory_space<vmem>>, vector<8x9xf32>
    %cst_25 = arith.constant dense<0.000000e+00> : vector<8x32xf32>
    %60 = tpu.matmul %59, %58, %cst_25 {dimension_numbers = #tpu.dot_dimension_numbers<[1], [0], [0], [1], [0, 0, 1, 1], [], []>} : vector<8x9xf32>, vector<9x32xf32>, vector<8x32xf32> -> vector<8x32xf32>
    %c272 = arith.constant 272 : index
    %c0_26 = arith.constant 0 : index
    %61 = vector.load %arg1[%c272, %c0_26] : memref<344x128xf32, #tpu.memory_space<vmem>>, vector<8x1xf32>
    %62 = vector.broadcast %61 : vector<8x1xf32> to vector<8x32xf32>
    %63 = arith.addf %60, %62 : vector<8x32xf32>
    %cst_27 = arith.constant 0.000000e+00 : f32
    %64 = vector.broadcast %cst_27 : f32 to vector<8x32xf32>
    %65 = arith.cmpf oge, %63, %64 : vector<8x32xf32>
    %cst_28 = arith.constant 1.000000e-01 : f32
    %66 = vector.broadcast %cst_28 : f32 to vector<8x32xf32>
    %67 = arith.mulf %66, %63 : vector<8x32xf32>
    %68 = arith.select %65, %63, %67 : vector<8x32xi1>, vector<8x32xf32>
    %69 = arith.addf %68, %38 : vector<8x32xf32>
    %cst_29 = arith.constant 0.000000e+00 : f32
    %70 = vector.broadcast %cst_29 : f32 to vector<8x1xf32>
    %71 = vector.extract_strided_slice %69 {offsets = [0, 0], sizes = [8, 31], strides = [1, 1]} : vector<8x32xf32> to vector<8x31xf32>
    %72 = tpu.concatenate %70, %71 in 1 : vector<8x1xf32>, vector<8x31xf32> -> vector<8x32xf32>
    %73 = vector.extract_strided_slice %40 {offsets = [0, 0], sizes = [1, 32], strides = [1, 1]} : vector<3x32xf32> to vector<1x32xf32>
    %74 = vector.broadcast %73 : vector<1x32xf32> to vector<8x32xf32>
    %75 = arith.mulf %72, %74 : vector<8x32xf32>
    %76 = vector.extract_strided_slice %69 {offsets = [0, 1], sizes = [8, 31], strides = [1, 1]} : vector<8x32xf32> to vector<8x31xf32>
    %cst_30 = arith.constant 0.000000e+00 : f32
    %77 = vector.broadcast %cst_30 : f32 to vector<8x1xf32>
    %78 = tpu.concatenate %76, %77 in 1 : vector<8x31xf32>, vector<8x1xf32> -> vector<8x32xf32>
    %79 = vector.extract_strided_slice %40 {offsets = [2, 0], sizes = [1, 32], strides = [1, 1]} : vector<3x32xf32> to vector<1x32xf32>
    %80 = vector.broadcast %79 : vector<1x32xf32> to vector<8x32xf32>
    %81 = arith.mulf %78, %80 : vector<8x32xf32>
    %82 = tpu.concatenate %75, %69, %81 in 0 : vector<8x32xf32>, vector<8x32xf32>, vector<8x32xf32> -> vector<24x32xf32>
    %c280 = arith.constant 280 : index
    %c0_31 = arith.constant 0 : index
    %83 = vector.load %arg1[%c280, %c0_31] : memref<344x128xf32, #tpu.memory_space<vmem>>, vector<8x24xf32>
    %cst_32 = arith.constant dense<0.000000e+00> : vector<8x32xf32>
    %84 = tpu.matmul %83, %82, %cst_32 {dimension_numbers = #tpu.dot_dimension_numbers<[1], [0], [0], [1], [0, 0, 1, 1], [], []>} : vector<8x24xf32>, vector<24x32xf32>, vector<8x32xf32> -> vector<8x32xf32>
    %c288 = arith.constant 288 : index
    %c0_33 = arith.constant 0 : index
    %85 = vector.load %arg1[%c288, %c0_33] : memref<344x128xf32, #tpu.memory_space<vmem>>, vector<8x1xf32>
    %86 = vector.broadcast %85 : vector<8x1xf32> to vector<8x32xf32>
    %87 = arith.addf %84, %86 : vector<8x32xf32>
    %cst_34 = arith.constant 0.000000e+00 : f32
    %88 = vector.broadcast %cst_34 : f32 to vector<8x32xf32>
    %89 = arith.cmpf oge, %87, %88 : vector<8x32xf32>
    %cst_35 = arith.constant 1.000000e-01 : f32
    %90 = vector.broadcast %cst_35 : f32 to vector<8x32xf32>
    %91 = arith.mulf %90, %87 : vector<8x32xf32>
    %92 = arith.select %89, %87, %91 : vector<8x32xi1>, vector<8x32xf32>
    %cst_36 = arith.constant 0.000000e+00 : f32
    %93 = vector.broadcast %cst_36 : f32 to vector<8x1xf32>
    %94 = vector.extract_strided_slice %92 {offsets = [0, 0], sizes = [8, 31], strides = [1, 1]} : vector<8x32xf32> to vector<8x31xf32>
    %95 = tpu.concatenate %93, %94 in 1 : vector<8x1xf32>, vector<8x31xf32> -> vector<8x32xf32>
    %96 = vector.extract_strided_slice %40 {offsets = [0, 0], sizes = [1, 32], strides = [1, 1]} : vector<3x32xf32> to vector<1x32xf32>
    %97 = vector.broadcast %96 : vector<1x32xf32> to vector<8x32xf32>
    %98 = arith.mulf %95, %97 : vector<8x32xf32>
    %99 = vector.extract_strided_slice %92 {offsets = [0, 1], sizes = [8, 31], strides = [1, 1]} : vector<8x32xf32> to vector<8x31xf32>
    %cst_37 = arith.constant 0.000000e+00 : f32
    %100 = vector.broadcast %cst_37 : f32 to vector<8x1xf32>
    %101 = tpu.concatenate %99, %100 in 1 : vector<8x31xf32>, vector<8x1xf32> -> vector<8x32xf32>
    %102 = vector.extract_strided_slice %40 {offsets = [2, 0], sizes = [1, 32], strides = [1, 1]} : vector<3x32xf32> to vector<1x32xf32>
    %103 = vector.broadcast %102 : vector<1x32xf32> to vector<8x32xf32>
    %104 = arith.mulf %101, %103 : vector<8x32xf32>
    %105 = tpu.concatenate %98, %92, %104 in 0 : vector<8x32xf32>, vector<8x32xf32>, vector<8x32xf32> -> vector<24x32xf32>
    %c296 = arith.constant 296 : index
    %c0_38 = arith.constant 0 : index
    %106 = vector.load %arg1[%c296, %c0_38] : memref<344x128xf32, #tpu.memory_space<vmem>>, vector<8x24xf32>
    %cst_39 = arith.constant dense<0.000000e+00> : vector<8x32xf32>
    %107 = tpu.matmul %106, %105, %cst_39 {dimension_numbers = #tpu.dot_dimension_numbers<[1], [0], [0], [1], [0, 0, 1, 1], [], []>} : vector<8x24xf32>, vector<24x32xf32>, vector<8x32xf32> -> vector<8x32xf32>
    %c304 = arith.constant 304 : index
    %c0_40 = arith.constant 0 : index
    %108 = vector.load %arg1[%c304, %c0_40] : memref<344x128xf32, #tpu.memory_space<vmem>>, vector<8x1xf32>
    %109 = vector.broadcast %108 : vector<8x1xf32> to vector<8x32xf32>
    %110 = arith.addf %107, %109 : vector<8x32xf32>
    %cst_41 = arith.constant 0.000000e+00 : f32
    %111 = vector.broadcast %cst_41 : f32 to vector<8x32xf32>
    %112 = arith.cmpf oge, %110, %111 : vector<8x32xf32>
    %cst_42 = arith.constant 1.000000e-01 : f32
    %113 = vector.broadcast %cst_42 : f32 to vector<8x32xf32>
    %114 = arith.mulf %113, %110 : vector<8x32xf32>
    %115 = arith.select %112, %110, %114 : vector<8x32xi1>, vector<8x32xf32>
    %116 = arith.addf %115, %39 : vector<8x32xf32>
    %cst_43 = arith.constant 0.000000e+00 : f32
    %117 = vector.broadcast %cst_43 : f32 to vector<8x1xf32>
    %118 = vector.extract_strided_slice %116 {offsets = [0, 0], sizes = [8, 31], strides = [1, 1]} : vector<8x32xf32> to vector<8x31xf32>
    %119 = tpu.concatenate %117, %118 in 1 : vector<8x1xf32>, vector<8x31xf32> -> vector<8x32xf32>
    %120 = vector.extract_strided_slice %40 {offsets = [0, 0], sizes = [1, 32], strides = [1, 1]} : vector<3x32xf32> to vector<1x32xf32>
    %121 = vector.broadcast %120 : vector<1x32xf32> to vector<8x32xf32>
    %122 = arith.mulf %119, %121 : vector<8x32xf32>
    %123 = vector.extract_strided_slice %116 {offsets = [0, 1], sizes = [8, 31], strides = [1, 1]} : vector<8x32xf32> to vector<8x31xf32>
    %cst_44 = arith.constant 0.000000e+00 : f32
    %124 = vector.broadcast %cst_44 : f32 to vector<8x1xf32>
    %125 = tpu.concatenate %123, %124 in 1 : vector<8x31xf32>, vector<8x1xf32> -> vector<8x32xf32>
    %126 = vector.extract_strided_slice %40 {offsets = [2, 0], sizes = [1, 32], strides = [1, 1]} : vector<3x32xf32> to vector<1x32xf32>
    %127 = vector.broadcast %126 : vector<1x32xf32> to vector<8x32xf32>
    %128 = arith.mulf %125, %127 : vector<8x32xf32>
    %129 = tpu.concatenate %122, %116, %128 in 0 : vector<8x32xf32>, vector<8x32xf32>, vector<8x32xf32> -> vector<24x32xf32>
    %c312 = arith.constant 312 : index
    %c0_45 = arith.constant 0 : index
    %130 = vector.load %arg1[%c312, %c0_45] : memref<344x128xf32, #tpu.memory_space<vmem>>, vector<3x24xf32>
    %cst_46 = arith.constant dense<0.000000e+00> : vector<3x32xf32>
    %131 = tpu.matmul %130, %129, %cst_46 {dimension_numbers = #tpu.dot_dimension_numbers<[1], [0], [0], [1], [0, 0, 1, 1], [], []>} : vector<3x24xf32>, vector<24x32xf32>, vector<3x32xf32> -> vector<3x32xf32>
    %c320 = arith.constant 320 : index
    %c0_47 = arith.constant 0 : index
    %132 = vector.load %arg1[%c320, %c0_47] : memref<344x128xf32, #tpu.memory_space<vmem>>, vector<3x1xf32>
    %133 = vector.broadcast %132 : vector<3x1xf32> to vector<3x32xf32>
    %134 = arith.addf %131, %133 : vector<3x32xf32>
    %135 = vector.extract_strided_slice %134 {offsets = [0, 0], sizes = [3, 16], strides = [1, 1]} : vector<3x32xf32> to vector<3x16xf32>
    %c0_48 = arith.constant 0 : index
    %c0_49 = arith.constant 0 : index
    %c0_50 = arith.constant 0 : index
    %136 = vector.load %arg3[%c0_48, %c0_49, %c0_50] : memref<2x3x16xf32, #tpu.memory_space<vmem>>, vector<1x3x16xf32>
    %137 = vector.shape_cast %136 : vector<1x3x16xf32> to vector<3x16xf32>
    %138 = vector.shape_cast %135 : vector<3x16xf32> to vector<1x3x16xf32>
    tpu.vector_store %arg3[%c0_48, %c0_49, %c0_50], %138 {strides = array<i32>} : memref<2x3x16xf32, #tpu.memory_space<vmem>>, vector<1x3x16xf32>,
    %139 = vector.extract_strided_slice %134 {offsets = [0, 16], sizes = [3, 16], strides = [1, 1]} : vector<3x32xf32> to vector<3x16xf32>
    %c1_51 = arith.constant 1 : index
    %c0_52 = arith.constant 0 : index
    %c0_53 = arith.constant 0 : index
    %140 = vector.load %arg3[%c1_51, %c0_52, %c0_53] : memref<2x3x16xf32, #tpu.memory_space<vmem>>, vector<1x3x16xf32>
    %141 = vector.shape_cast %140 : vector<1x3x16xf32> to vector<3x16xf32>
    %142 = vector.shape_cast %139 : vector<3x16xf32> to vector<1x3x16xf32>
    tpu.vector_store %arg3[%c1_51, %c0_52, %c0_53], %142 {strides = array<i32>} : memref<2x3x16xf32, #tpu.memory_space<vmem>>, vector<1x3x16xf32>,
    return
  }
}

</mosaic_0001>

<bundles_post_ra>
// kernel: fwd.1
= control target key start
LH: loop header
LB: loop body
LE: loop exit
PB: predicated region body
PF: predicated region fallthrough
CT: control target
= control target key end

     0   :  { %8 = vsyncpa [#allocation4], 0  ;;  %s1174_s0 = inlined_call_operand.vmem [shape: s32[2], index: 0, kind: input, shape index: {}]   ;;  %s1175_s1 = inlined_call_operand.hbm [shape: f32[344,128], index: 1, kind: input, shape index: {}]   ;;  %s1176_s2 = inlined_call_operand.vmem [shape: f32[2,3,16], index: 2, kind: input, shape index: {}]   ;;  %s1177_s3 = inlined_call_operand.vmem [shape: f32[2,3,16], index: 3, kind: output, shape index: {}]  }
   0x1   :  { %s16_s14 = sshll.u32 %s1174_s0, 4  ;;  %s17_s14 = int_to_ptr.vmem [resolvable:$true] %s16_s14 }
   0x2   :  { %9 = vsyncpa [#allocation3], 0  ;;  %s1010_s15 = scalar_lea.vmem %s17_s14, 16  ;;  %p1015_p1 = scmp.lt.s32.totalorder %s17_s14, %s17_s14 }
   0x3   :  { %p1011_p0 = scmp.ne.s32.totalorder %s17_s14, %s1010_s15  ;;  %p1016_p2 = scmp.lt.s32.totalorder %s1010_s15, %s1010_s15 }
   0x5   :  { %p1017_p3 = por %p1016_p2, %p1015_p1 }
   0x7   :  { %p1018_p4 = pnand %p1017_p3, %p1011_p0 }
   0x9   :  { %1021 = shalt.err (!%p1018_p4)
}
   0xa   :  { %s1046_s16 = smov [#allocation2]   ;;  %s1047_s17 = smov [#allocation5]  }
   0xb   :  { %19 = dma.vmem_to_smem %s17_s14, 16, %s1046_s16, [#allocation4]  }
   0xc   :  { %s25_s18 = sshll.u32 %s1047_s17, 4  ;;  %s26_s18 = int_to_ptr.vmem [resolvable:$true] %s25_s18 }
   0xd   :  { %s1030_s19 = scalar_lea.vmem %s26_s18, 5504  ;;  %p1035_p6 = scmp.lt.s32.totalorder %s26_s18, %s26_s18 }
   0xe   :  { %p1031_p5 = scmp.ne.s32.totalorder %s26_s18, %s1030_s19  ;;  %p1036_p7 = scmp.lt.s32.totalorder %s1030_s19, %s1030_s19 }
  0x10   :  { %p1037_p8 = por %p1036_p7, %p1035_p6 }
  0x12   :  { %p1038_p9 = pnand %p1037_p8, %p1031_p5 }
  0x14   :  { %1041 = shalt.err (!%p1038_p9)
}
  0x15   :  { %s1048_s0 = smov 128   ;;  %s1049_s20 = smov 8  }
  0x16   :  { %31 = dma.hbm_to_vmem [thread:$0]  %s1175_s1, 5504, %s26_s18, [#allocation3], %s1048_s0, %s1048_s0, %s1049_s20  }
  0x17   :  { %1042 = dma.done.wait [#allocation4], 16  }
  0x18   :  { %1043 = vsyncadd [#allocation4], 4294967280 }
  0x19   :  { %1044 = dma.done.wait [#allocation3], 5504  }
  0x1a   :  { %1045 = vsyncadd [#allocation3], 4294961792 }
  0x1b   :  { %40 = sfence }
  0x1c   :  { %v55_v0 = vld [vmem:[#allocation5 + $0x50] sm:$0xff]  ;;  %v1050_v1 = vmov 0.0   ;;  %v54_v2 = vld [vmem:[#allocation5 + $0x48] sm:$0xff]  ;;  %vm1051_vm0 = vmmov 0   ;;  %s41_s23 = sld [smem:[#allocation2]]  ;;  %v53_v3 = vld [vmem:[#allocation5 + $0x40] sm:$0xff]  ;;  %v432_v55 = vlaneseq }
  0x1d   :  { %899 = vmatprep.subr.mxu0 %v1050_v1  ;;  %907 = vmatprep.mubr.msk.f32.mxu0 %vm1051_vm0, %v1050_v1  ;;  %s840_s24 = sld [smem:[#allocation2 + $0x1]]  ;;  %v52_v4 = vld [vmem:[#allocation5 + $0x38] sm:$0xff]  ;;  %vm50_vm1 = vcmask 1040384   ;;  %vm61_vm2 = vcmask 261120   ;;  %v156_v10 = vld [vmem:[#allocation5 + $0xd0] sm:$0xff]  ;;  %v155_v11 = vld [vmem:[#allocation5 + $0xc8] sm:$0xff] }
  0x1e   :  { %900 = vmatpush3.msra.mxu0 %v55_v0  ;;  %910 = vmatprep.subr.mxu1 %v1050_v1  ;;  %v157_v9 = vld [vmem:[#allocation5 + $0xd8] sm:$0xff]  ;;  %v154_v12 = vld [vmem:[#allocation5 + $0xc0] sm:$0xff]  ;;  %v152_v14 = vld [vmem:[#allocation5 + $0xb0] sm:$0xff]  ;;  %s1052_s28 = smov 16   ;;  %v1053_v27 = vmov 0   ;;  %vm424_vm3 = vcmask 130048  }
  0x1f   :  { %901 = vmatprep.subr.mxu0 %v1050_v1  ;;  %942 = vmatprep.mubr.msk.f32.mxu1 %vm1051_vm0, %v1050_v1  ;;  %v153_v13 = vld [vmem:[#allocation5 + $0xb8] sm:$0xff]  ;;  %v151_v15 = vld [vmem:[#allocation5 + $0xa8] sm:$0xff]  ;;  %v150_v16 = vld [vmem:[#allocation5 + $0xa0] sm:$0xff]  ;;  %s1054_s4 = smov 127   ;;  %s1055_s5 = smov 1   ;;  %vm337_vm4 = vcmask 1041408  }
  0x20   :  { %902 = vmatpush3.msra.mxu0 %v54_v2  ;;  %911 = vmatpush3.msra.mxu1 %v157_v9  ;;  %v149_v17 = vld [vmem:[#allocation5 + $0x98] sm:$0xff]  ;;  %v148_v18 = vld [vmem:[#allocation5 + $0x90] sm:$0xff]  ;;  %v147_v19 = vld [vmem:[#allocation5 + $0x88] sm:$0xff]  ;;  %v433_v56 = vshrl.u32 %v432_v55, 7  ;;  %vm440_vm5 = vcmask 252928   ;;  %vm430_vm6 = vcmask 7168  }
  0x21   :  { %903 = vmatprep.subr.mxu0 %v1050_v1  ;;  %912 = vmatprep.subr.mxu1 %v1050_v1  ;;  %v146_v20 = vld [vmem:[#allocation5 + $0x80] sm:$0xff]  ;;  %v145_v21 = vld [vmem:[#allocation5 + $0x78] sm:$0xff]  ;;  %v144_v22 = vld [vmem:[#allocation5 + $0x70] sm:$0xff]  ;;  %vm330_vm7 = vcmask 15360   ;;  %vm452_vm8 = vcmask 1042432   ;;  %vm454_vm9 = vcmask 1045504  }
  0x22   :  { %904 = vmatpush3.msra.mxu0 %v53_v3  ;;  %s42_s1 = scalar_lea.vmem [#allocation5], %s41_s23  ;;  %913 = vmatpush3.msra.mxu1 %v156_v10  ;;  %v143_v23 = vld [vmem:[#allocation5 + $0x68] sm:$0xff]  ;;  %v142_v24 = vld [vmem:[#allocation5 + $0x60] sm:$0xff]  ;;  %v841_v28 = vld [vmem:[#allocation5 + $0x58] ss:$0 sm:$0xff]  ;;  %v444_v58 = vsub.s32 2, %v433_v56 }
  0x23   :  { %905 = vmatprep.subr.mxu0 %v1050_v1  ;;  %v43_v5 = vld [vmem:[%s42_s1] sm:$0x1]  ;;  %s45_s25 = scalar_lea.vmem [#allocation5], %s840_s24  ;;  %914 = vmatprep.subr.mxu1 %v1050_v1  ;;  %v849_v25 = vld [vmem:[%s1176_s2 + $0x4] sm:$0x7]  ;;  %v240_v40 = vld [vmem:[#allocation5 + $0xe8] sm:$0xff] }
  0x24   :  { %906 = vmatpush3.msra.mxu0 %v52_v4  ;;  %v46_v6 = vld [vmem:[%s45_s25] sm:$0x1]  ;;  %915 = vmatpush3.msra.mxu1 %v155_v11  ;;  %v242_v41 = vld [vmem:[#allocation5 + $0xf8] sm:$0xff]  ;;  %v457_v42 = vld [vmem:[#allocation5 + $0x110] sm:$0xff]  ;;  %v434_v60 = vsub.s32 0, %v433_v56  ;;  %vm463_vm10 = vcmask 72704  }
  0x25   :  { %v48_v7 = vrot.slane %v46_v6, 7  ;;  %916 = vmatprep.subr.mxu1 %v1050_v1  ;;  %v243_v26 = vld [vmem:[#allocation5 + $0x100] sm:$0xff]  ;;  %421 = vrot.lane.b32.xlu0 %v849_v25, %s1052_s28  ;;  %v241_v52 = vld [vmem:[#allocation5 + $0xf0] sm:$0xff]  ;;  %v416_v59 = vld [vmem:[#allocation5 + $0x148] sm:$0x7]  ;;  %vm561_vm12 = vcmask 195584  }
  0x26   :  { %917 = vmatpush3.msra.mxu1 %v154_v12  ;;  %1001 = vset.pattern.permute.xlu1 %v1053_v27  ;;  %v417_v35 = vld [vmem:[%s1176_s2] sm:$0x7]  ;;  %v329_v53 = vld [vmem:[#allocation5 + $0x150] sm:$0x3]  ;;  %v1117_v62 = vrot.slane %v416_v59, %v444_v58  ;;  %v1120_v0 = vrot.slane %v416_v59, %v434_v60  ;;  %v744_v60 = vld [vmem:[#allocation5 + $0x138] sm:$0x7] }
  0x27   :  { %v51_v8 = vsel %vm50_vm1, %v43_v5, %v48_v7  ;;  %918 = vmatprep.subr.mxu1 %v1050_v1  ;;  %251 = vperm.xlu1 %1001, %v243_v26   ;;  %v844_v43 = vld [vmem:[#allocation5 + $0xe0] ss:$0 sm:$0xff]  ;;  %vm824_vm15 = vcmask 124928   ;;  %s1056_s2 = smov 112  }
  0x28   :  { %908 = vmatmul.mubr.msk.f32.vlgmr.msra.gmra.mxu0 %vm61_vm2, %v51_v8  ;;  %919 = vmatpush3.msra.mxu1 %v153_v13  ;;  %v456_v13 = vld [vmem:[#allocation5 + $0x108] sm:$0xff] }
  0x29   :  { %920 = vmatprep.subr.mxu1 %v1050_v1  ;;  %1000 = vset.pattern.permute.xlu0 %v1053_v27 }
  0x2a   :  { %921 = vmatpush3.msra.mxu1 %v152_v14  ;;  %246 = vperm.xlu0 %1000, %v242_v41  }
  0x2b   :  { %922 = vmatprep.subr.mxu1 %v1050_v1  ;;  %950 = vmatprep.subr.msk.mxu0 %vm337_vm4, %v329_v53 }
  0x2c   :  { %923 = vmatpush3.msra.mxu1 %v151_v15  ;;  %951 = vmatpush3.msk.msra.mxu0 %vm337_vm4, %v329_v53  ;;  %v745_v53 = vld [vmem:[#allocation5 + $0x140] sm:$0x7] }
  0x2d   :  { %924 = vmatprep.subr.mxu1 %v1050_v1  ;;  %955 = vmatprep.subr.mxu0 %v1050_v1 }
  0x2e   :  { %925 = vmatpush3.msra.mxu1 %v150_v16  ;;  %460 = vperm.xlu0 %1000, %v457_v42  }
  0x2f   :  { %926 = vmatprep.subr.mxu1 %v1050_v1 }
  0x30   :  { %927 = vmatpush3.msra.mxu1 %v149_v17 }
  0x31   :  { %928 = vmatprep.subr.mxu1 %v1050_v1 }
  0x32   :  { %929 = vmatpush3.msra.mxu1 %v148_v18 }
  0x33   :  { %930 = vmatprep.subr.mxu1 %v1050_v1 }
  0x34   :  { %931 = vmatpush3.msra.mxu1 %v147_v19 }
  0x35   :  { %932 = vmatprep.subr.mxu1 %v1050_v1 }
  0x36   :  { %933 = vmatpush3.msra.mxu1 %v146_v20 }
  0x37   :  { %934 = vmatprep.subr.mxu1 %v1050_v1 }
  0x38   :  { %935 = vmatpush3.msra.mxu1 %v145_v21 }
  0x39   :  { %936 = vmatprep.subr.mxu1 %v1050_v1 }
  0x3a   :  { %937 = vmatpush3.msra.mxu1 %v144_v22 }
  0x3b   :  { %938 = vmatprep.subr.mxu1 %v1050_v1 }
  0x3c   :  { %939 = vmatpush3.msra.mxu1 %v143_v23 }
  0x3d   :  { %940 = vmatprep.subr.mxu1 %v1050_v1 }
  0x3e   :  { %941 = vmatpush3.msra.mxu1 %v142_v24  ;;  %v555_v24 = vld [vmem:[#allocation5 + $0x120] sm:$0xff] }
  0x97   :  { %v422_v36 = vpop.permute.xlu0 %421 }
  0x98   :  { %v425_v37 = vsel %vm424_vm3, %v417_v35, %v422_v36 }
  0x99   :  { %437 = vrot.lane.b32.xlu1 %v425_v37, %s1054_s4  ;;  %v447_v5 = vrot.slane %v425_v37, 5 }
  0x9d   :  { %427 = vrot.lane.b32.xlu1 %v425_v37, %s1055_s5 }
  0xa2   :  { %v252_v54 = vpop.permute.xlu1 %251 }
  0xa5   :  { %v247_v7 = vpop.permute.xlu0 %246 }
  0xa9   :  { %v461_v17 = vpop.permute.xlu0 %460 }
  0xe8   :  { %v131_v29 = vpop.f32.mrf.mxu0 }
  0xe9   :  { %v132_v30 = vadd.f32 %v841_v28, %v131_v29 }
  0xea   :  { %v909_v31 = vpop.f32.mrf.mxu0 }
  0xeb   :  { %v843_v32 = vmul.f32 -1.442695, %v132_v30  ;;  %v554_v31 = vld [vmem:[#allocation5 + $0x118] sm:$0xff] }
  0xed   :  { %1002 = vpow2.f32 %v843_v32 }
  0xfa   :  { %v1003_v33 = vpop.eup %1002 }
  0xfb   :  { %v138_v34 = vadd.f32 1.0, %v1003_v33 }
  0xfd   :  { %1004 = vrcp.f32 %v138_v34 }
 0x10a   :  { %v1005_v38 = vpop.eup %1004 }
 0x10b   :  { %v141_v39 = vmul.f32 %v1005_v38, %v132_v30  ;;  %v438_v57 = vpop.permute.xlu1 %437  ;;  %v650_v38 = vld [vmem:[#allocation5 + $0x130] sm:$0xff] }
 0x10c   :  { %v441_v63 = vsel %vm440_vm5, %v438_v57, 0.0 }
 0x10d   :  { %943 = vmatmul.mubr.f32.vlgmr.msra.gmra.mxu1 %v141_v39  ;;  %v446_v3 = vmul.f32 %v1117_v62, %v441_v63 }
 0x10e   :  { %947 = vmatprep.mubr.f32.mxu1 %v240_v40 }
 0x10f   :  { %v428_v61 = vpop.permute.xlu1 %427  ;;  %v450_v10 = vrot.slane %v446_v3, 2 }
 0x110   :  { %v431_v2 = vsel %vm430_vm6, 0.0, %v428_v61 }
 0x111   :  { %v436_v6 = vmul.f32 %v1120_v0, %v431_v2 }
 0x113   :  { %v453_v12 = vsel %vm452_vm8, %v436_v6, %v447_v5 }
 0x114   :  { %v455_v14 = vsel %vm454_vm9, %v453_v12, %v450_v10 }
 0x1cd   :  { %v229_v44 = vpop.f32.mrf.mxu1 }
 0x1ce   :  { %v230_v45 = vadd.f32 %v844_v43, %v229_v44 }
 0x1cf   :  { %v944_v46 = vpop.f32.mrf.mxu1 }
 0x1d0   :  { %v845_v47 = vmul.f32 -1.442695, %v230_v45 }
 0x1d2   :  { %1006 = vpow2.f32 %v845_v47 }
 0x1df   :  { %v1007_v48 = vpop.eup %1006 }
 0x1e0   :  { %v236_v49 = vadd.f32 1.0, %v1007_v48 }
 0x1e2   :  { %1008 = vrcp.f32 %v236_v49 }
 0x1ef   :  { %v1009_v50 = vpop.eup %1008 }
 0x1f0   :  { %v239_v51 = vmul.f32 %v1009_v50, %v230_v45  ;;  %v649_v45 = vld [vmem:[#allocation5 + $0x128] sm:$0xff] }
 0x1f2   :  { %945 = vmatprep.subr.mxu1 %v239_v51 }
 0x1f3   :  { %946 = vmatpush3.xpose.msra.mxu1 %v239_v51 }
 0x1f6   :  { %948 = vmatmul.mubr.f32.vlgmr.msra.gmra.mxu1 %v241_v52 }
 0x2b6   :  { %v949_v4 = vpop.f32.mrf.mxu1 }
 0x2b7   :  { %v326_v11 = vadd.f32 %v949_v4, %v252_v54 }
 0x2b8   :  { %v320_v8 = vpop.f32.mrf.mxu1 }
 0x2b9   :  { %v321_v9 = vadd.f32 %v320_v8, %v247_v7 }
 0x2bb   :  { %952 = vmatprep.mubr.msk.f32.mxu0 %vm330_vm7, %v321_v9 }
 0x2bc   :  { %953 = vmatmul.mubr.msk.f32.vlgmr.msra.gmra.mxu0 %vm330_vm7, %v326_v11 }
 0x2bd   :  { %956 = vmatpush3.msk.msra.mxu0 %vm50_vm1, %v450_v10  ;;  %959 = vmatprep.mubr.msk.f32.mxu0 %vm1051_vm0, %v1050_v1 }
 0x2be   :  { %957 = vmatprep.subr.mxu0 %v1050_v1 }
 0x2bf   :  { %958 = vmatpush3.msra.mxu0 %v455_v14 }
 0x2c0   :  { %960 = vmatmul.mubr.msk.f32.vlgmr.msra.gmra.mxu0 %vm463_vm10, %v456_v13  ;;  %962 = vmatprep.subr.mxu0 %v1050_v1 }
 0x2c1   :  { %968 = vmatprep.mubr.msk.f32.mxu0 %vm1051_vm0, %v1050_v1 }
 0x37c   :  { %v1132_v15 = vpop.f32.mrf.mxu0 }
 0x37e   :  { %v407_v16 = vpop.f32.mrf.mxu0 }
 0x380   :  { %v535_v18 = vpop.f32.mrf.mxu0 }
 0x381   :  { %v536_v19 = vadd.f32 %v535_v18, %v461_v17 }
 0x382   :  { %v961_v20 = vpop.f32.mrf.mxu0 }
 0x383   :  { %vm539_vm11 = vcmp.ge.f32.partialorder %v536_v19, 0.0  ;;  %v540_v21 = vmul.f32 0.1, %v536_v19 }
 0x385   :  { %v541_v22 = vsel %vm539_vm11, %v536_v19, %v540_v21 }
 0x386   :  { %v542_v23 = vadd.f32 %v541_v22, %v407_v16 }
 0x388   :  { %544 = vrot.lane.b32.xlu0 %v542_v23, %s1055_s5  ;;  %549 = vrot.lane.b32.xlu1 %v542_v23, %s1054_s4 }
 0x38c   :  { %558 = vperm.xlu1 %1001, %v555_v24  }
 0x3fa   :  { %v545_v25 = vpop.permute.xlu0 %544  ;;  %v550_v26 = vpop.permute.xlu1 %549 }
 0x3fb   :  { %v552_v27 = vsel %vm440_vm5, %v550_v26, 0.0  ;;  %v547_v29 = vsel %vm430_vm6, 0.0, %v545_v25 }
 0x3fc   :  { %v553_v28 = vmul.f32 %v552_v27, %v1117_v62  ;;  %v548_v30 = vmul.f32 %v547_v29, %v1120_v0 }
 0x3fe   :  { %963 = vmatpush3.msra.mxu0 %v553_v28 }
 0x3ff   :  { %964 = vmatprep.subr.mxu0 %v1050_v1 }
 0x400   :  { %965 = vmatpush3.msra.mxu0 %v542_v23 }
 0x401   :  { %966 = vmatprep.subr.mxu0 %v1050_v1 }
 0x402   :  { %967 = vmatpush3.msra.mxu0 %v548_v30 }
 0x403   :  { %969 = vmatmul.mubr.msk.f32.vlgmr.msra.gmra.mxu0 %vm561_vm12, %v554_v31  ;;  %971 = vmatprep.subr.mxu0 %v1050_v1 }
 0x404   :  { %977 = vmatprep.mubr.msk.f32.mxu0 %vm1051_vm0, %v1050_v1 }
 0x407   :  { %v559_v32 = vpop.permute.xlu1 %558 }
 0x4c3   :  { %v631_v33 = vpop.f32.mrf.mxu0 }
 0x4c4   :  { %v632_v34 = vadd.f32 %v631_v33, %v559_v32 }
 0x4c5   :  { %v970_v35 = vpop.f32.mrf.mxu0 }
 0x4c6   :  { %v636_v36 = vmul.f32 0.1, %v632_v34  ;;  %vm635_vm13 = vcmp.ge.f32.partialorder %v632_v34, 0.0 }
 0x4c8   :  { %v637_v37 = vsel %vm635_vm13, %v632_v34, %v636_v36 }
 0x4c9   :  { %639 = vrot.lane.b32.xlu1 %v637_v37, %s1055_s5  ;;  %644 = vrot.lane.b32.xlu0 %v637_v37, %s1054_s4 }
 0x4cd   :  { %653 = vperm.xlu0 %1000, %v650_v38  }
 0x53b   :  { %v640_v39 = vpop.permute.xlu1 %639  ;;  %v645_v40 = vpop.permute.xlu0 %644 }
 0x53c   :  { %v647_v41 = vsel %vm440_vm5, %v645_v40, 0.0  ;;  %v642_v43 = vsel %vm430_vm6, 0.0, %v640_v39 }
 0x53d   :  { %v648_v42 = vmul.f32 %v647_v41, %v1117_v62  ;;  %v643_v44 = vmul.f32 %v642_v43, %v1120_v0 }
 0x53f   :  { %972 = vmatpush3.msra.mxu0 %v648_v42 }
 0x540   :  { %973 = vmatprep.subr.mxu0 %v1050_v1 }
 0x541   :  { %974 = vmatpush3.msra.mxu0 %v637_v37 }
 0x542   :  { %975 = vmatprep.subr.mxu0 %v1050_v1 }
 0x543   :  { %976 = vmatpush3.msra.mxu0 %v643_v44 }
 0x544   :  { %978 = vmatmul.mubr.msk.f32.vlgmr.msra.gmra.mxu0 %vm561_vm12, %v649_v45  ;;  %980 = vmatprep.subr.mxu0 %v1050_v1 }
 0x545   :  { %986 = vmatprep.mubr.msk.f32.mxu0 %vm1051_vm0, %v1050_v1 }
 0x548   :  { %v654_v46 = vpop.permute.xlu0 %653 }
 0x604   :  { %v725_v47 = vpop.f32.mrf.mxu0 }
 0x605   :  { %v726_v48 = vadd.f32 %v725_v47, %v654_v46 }
 0x606   :  { %v979_v49 = vpop.f32.mrf.mxu0 }
 0x607   :  { %vm729_vm14 = vcmp.ge.f32.partialorder %v726_v48, 0.0  ;;  %v730_v50 = vmul.f32 0.1, %v726_v48 }
 0x609   :  { %v731_v51 = vsel %vm729_vm14, %v726_v48, %v730_v50 }
 0x60a   :  { %v732_v52 = vadd.f32 %v1132_v15, %v731_v51 }
 0x60c   :  { %734 = vrot.lane.b32.xlu0 %v732_v52, %s1055_s5  ;;  %739 = vrot.lane.b32.xlu1 %v732_v52, %s1054_s4 }
 0x610   :  { %748 = vperm.xlu1 %1001, %v745_v53  }
 0x67e   :  { %v735_v54 = vpop.permute.xlu0 %734  ;;  %v740_v55 = vpop.permute.xlu1 %739 }
 0x67f   :  { %v742_v56 = vsel %vm440_vm5, %v740_v55, 0.0  ;;  %v737_v58 = vsel %vm430_vm6, 0.0, %v735_v54 }
 0x680   :  { %v743_v57 = vmul.f32 %v742_v56, %v1117_v62  ;;  %v738_v59 = vmul.f32 %v737_v58, %v1120_v0 }
 0x682   :  { %981 = vmatpush3.msra.mxu0 %v743_v57 }
 0x683   :  { %982 = vmatprep.subr.mxu0 %v1050_v1 }
 0x684   :  { %983 = vmatpush3.msra.mxu0 %v732_v52 }
 0x685   :  { %984 = vmatprep.subr.mxu0 %v1050_v1 }
 0x686   :  { %985 = vmatpush3.msra.mxu0 %v738_v59 }
 0x687   :  { %987 = vmatmul.mubr.msk.f32.vlgmr.msra.gmra.mxu0 %vm561_vm12, %v744_v60 }
 0x68b   :  { %v749_v61 = vpop.permute.xlu1 %748 }
 0x747   :  { %v820_v63 = vpop.f32.mrf.mxu0 }
 0x748   :  { %v821_v2 = vadd.f32 %v820_v63, %v749_v61 }
 0x749   :  { %v988_v3 = vpop.f32.mrf.mxu0 }
 0x74a   :  { %827 = vrot.lane.b32.xlu0 %v821_v2, %s1056_s2  ;;  %825 = vst.msk [vmem:[%s1177_s3] sm:$0x7] %vm824_vm15, %v821_v2 }
 0x7bc   :  { %v828_v62 = vpop.permute.xlu0 %827 }
 0x7bd   :  { %855 = vst.msk [vmem:[%s1177_s3 + $0x4] sm:$0x7] %vm824_vm15, %v828_v62 }
 0x7be   :  { %836 = vsyncpa [#allocation3], 1 }
 0x7bf   :  { %837 = vsyncpa [#allocation4], 1 }

</bundles_post_ra>
